<compile_context>
chip_gen: v5e
topology: v5e:2x2
jax: 0.10.0
libtpu: 0.0.40
codegen_flags: <defaults>
</compile_context>

<pallas_src>
import functools

import jax
import jax.numpy as jnp
from jax.experimental import pallas as pl
from jax.experimental.pallas import tpu as pltpu

_SUBLANE = 8        # f32 sublane count (second-to-last-dim tiling unit)
_MIN_STEPS = 4      # >= 2 grid steps per TensorCore on v7x megacore


def _decoder_kernel(num_linear, matmul_dtype, precision, *refs):
    """refs = (x_ref, w0, b0, w1, b1, ..., w_{L-1}, b_{L-1}, o_ref).

    Runs the full MLP forward for one batch tile entirely in VMEM.
    Matmuls run on the MXU in `matmul_dtype` with f32 accumulation
    (preferred_element_type); bias add (VPU) and tanh (EUP) stay in f32.
    Tanh follows every linear except the last.
    """
    x_ref = refs[0]
    o_ref = refs[-1]
    param_refs = refs[1:-1]

    h = x_ref[...]                       # already in matmul_dtype (cast in wrapper)
    for li in range(num_linear):
        w = param_refs[2 * li][...]
        b = param_refs[2 * li + 1][...]
        h = jnp.dot(h.astype(matmul_dtype), w,
                    preferred_element_type=jnp.float32,
                    precision=precision) + b
        if li != num_linear - 1:
            h = jnp.tanh(h)
    o_ref[...] = h.astype(o_ref.dtype)


def _tile_cap():
    """Per-generation batch-tile cap: bigger on 128-MiB-VMEM chips (v5e/v6e),
    conservative on v7x (64 MiB per TensorCore)."""
    vmem = 64 * 2**20
    try:
        info = pltpu.get_tpu_info()
        vmem = int(getattr(info, "vmem_capacity_bytes", vmem))
    except Exception:
        pass
    return 16384 if vmem >= 100 * 2**20 else 8192


def _pick_batch_tile(batch, cap):
    """Largest multiple-of-8 tile (<= cap) that still leaves >= _MIN_STEPS grid
    steps when the batch is big enough; tiny batches get a single 8-row-aligned
    tile. The wrapper zero-pads the batch to a tile multiple, so the tile does
    not need to divide `batch`."""
    target = -(-batch // _MIN_STEPS)                   # ceil(batch / 4)
    target = -(-target // _SUBLANE) * _SUBLANE         # round up to multiple of 8
    return max(_SUBLANE, min(cap, target))


def decoder_forward(x, weights, biases, *, batch_tile=None,
                    matmul_dtype=jnp.bfloat16, out_dtype=jnp.float32,
                    precision=None):
    """Apply the Decoder MLP with a single pallas_call.

    x            : [B, in_dim] (B = nodes * timesteps batched together)
    weights      : list of [f_in, f_out] float32 (transpose of nn.Linear.weight)
    biases       : list of [f_out] float32
    matmul_dtype : MXU operand dtype; bf16 (default) gives ~2x MXU throughput
                   and half the x/weight bytes (accumulation stays f32).
    out_dtype    : HBM writeback dtype (bf16 halves output bytes if allowed).
    precision    : optional lax.Precision for the f32 matmul path
                   (e.g. HIGHEST for bit-faithful f32).
    """
    B, in_dim = x.shape
    num_linear = len(weights)
    out_dim = weights[-1].shape[1]

    # --- batch tiling (pad B to a tile multiple; slice pad rows off after) ---
    if batch_tile is None:
        batch_tile = _pick_batch_tile(B, _tile_cap())
    if batch_tile % _SUBLANE != 0:
        raise ValueError(f"batch_tile ({batch_tile}) must be a multiple of {_SUBLANE}")
    grid_steps = pl.cdiv(B, batch_tile)
    B_pad = grid_steps * batch_tile

    x_in = x.astype(matmul_dtype)
    if B_pad != B:
        x_in = jnp.pad(x_in, ((0, B_pad - B), (0, 0)))

    # Interleave params as (w0, b0, w1, b1, ...). Weights are cast to the MXU
    # operand dtype (halves their HBM/VMEM bytes when bf16); biases stay f32
    # (VPU/EUP math is kept f32, which also matters on v5e) as 2-D rows.
    params = []
    for w, b in zip(weights, biases):
        params.append(w.astype(matmul_dtype))
        params.append(b.reshape(1, -1).astype(jnp.float32))

    # --- BlockSpecs ---------------------------------------------------------
    # x / out: one batch tile per grid step (auto double-buffered pipeline).
    # Output is written at its true width (out_dim): masked vst, but ~16x less
    # HBM writeback than padding to 128 lanes for out_dim=8.
    x_spec = pl.BlockSpec((batch_tile, in_dim), lambda i: (i, 0))
    out_spec = pl.BlockSpec((batch_tile, out_dim), lambda i: (i, 0))
    # weights / biases: whole-array, single-copy VMEM residents for all steps.
    param_specs = [pl.BlockSpec(memory_space=pltpu.MemorySpace.VMEM) for _ in params]

    # --- VMEM budget hint (sized for the larger tiles, < v7x 64 MiB/core) ----
    mm_itemsize = jnp.dtype(matmul_dtype).itemsize
    out_itemsize = jnp.dtype(out_dtype).itemsize
    max_width = max([in_dim] + [w.shape[1] for w in weights])
    param_bytes = sum(int(p.size) * p.dtype.itemsize for p in params)
    act_bytes = 2 * batch_tile * (in_dim * mm_itemsize + out_dim * out_itemsize)
    tmp_bytes = 4 * batch_tile * max_width * 4           # running `h` temporaries (f32)
    vmem_limit = int(min(max(2 * (param_bytes + act_bytes + tmp_bytes), 16 * 2**20),
                         48 * 2**20))

    # --- cost estimate (helps XLA schedule ops around this short kernel) -----
    flops = 2 * B_pad * sum(w.shape[0] * w.shape[1] for w in weights)
    transcendentals = B_pad * sum(w.shape[1] for w in weights[:-1])     # tanh count
    bytes_accessed = (int(x_in.size) * mm_itemsize
                      + param_bytes
                      + B_pad * out_dim * out_itemsize)
    cost = pl.CostEstimate(flops=flops, transcendentals=transcendentals,
                           bytes_accessed=bytes_accessed)

    kernel = functools.partial(_decoder_kernel, num_linear, matmul_dtype, precision)

    out = pl.pallas_call(
        kernel,
        out_shape=jax.ShapeDtypeStruct((B_pad, out_dim), out_dtype),
        grid_spec=pltpu.PrefetchScalarGridSpec(
            num_scalar_prefetch=0,
            grid=(grid_steps,),
            in_specs=[x_spec] + param_specs,
            out_specs=out_spec,
        ),
        compiler_params=pltpu.CompilerParams(
            dimension_semantics=("parallel",),   # batch tiles shard across TCs
            vmem_limit_bytes=vmem_limit,
        ),
        cost_estimate=cost,
    )(x_in, *params)

    return out[:B] if B_pad != B else out


def init_decoder_params(key, in_dim, out_dim, hidden_dim, hidden_layers):
    """Deterministic synthetic parameter init (shapes match the nn.Linear stack)."""
    dims = [in_dim] + [hidden_dim] * hidden_layers + [out_dim]
    weights, biases = [], []
    for li in range(len(dims) - 1):
        key, kw, kb = jax.random.split(key, 3)
        fan_in, fan_out = dims[li], dims[li + 1]
        bound = 1.0 / jnp.sqrt(fan_in)
        # Stored as [fan_in, fan_out] (transpose of PyTorch's [out, in]).
        w = jax.random.uniform(kw, (fan_in, fan_out), jnp.float32, -bound, bound)
        b = jax.random.uniform(kb, (fan_out,), jnp.float32, -bound, bound)
        weights.append(w)
        biases.append(b)
    return weights, biases


def decoder_reference(x, weights, biases):
    """Plain-JAX reference of the same forward pass."""
    h = x
    for li, (w, b) in enumerate(zip(weights, biases)):
        h = h @ w + b
        if li != len(weights) - 1:
            h = jnp.tanh(h)
    return h


if __name__ == "__main__":
    # NerveNet applies the decoder per graph node, so in practice many node
    # activations are batched through one call: B = nodes * timesteps.
    batch = 512
    in_dim = 16
    hidden_dim = 32
    hidden_layers = 3
    out_dim = 8

    key = jax.random.PRNGKey(0)
    key, kx = jax.random.split(key)
    x = jax.random.normal(kx, (batch, in_dim), jnp.float32)

    weights, biases = init_decoder_params(
        key, in_dim, out_dim, hidden_dim, hidden_layers
    )
    ref = decoder_reference(x, weights, biases)

    # Default path: bf16 MXU operands, f32 accumulation, f32 output
    # (grid of 4 steps at batch_tile=128 -> >= 2 steps per v7x TensorCore).
    out_bf16 = jax.block_until_ready(decoder_forward(x, weights, biases))
    assert out_bf16.shape == (batch, out_dim)
    assert jnp.allclose(out_bf16, ref, atol=5e-2, rtol=5e-2), "bf16 mismatch vs. reference"

    # f32 MXU operands (tighter-tolerance path).
    out_f32 = jax.block_until_ready(
        decoder_forward(x, weights, biases, matmul_dtype=jnp.float32)
    )
    assert out_f32.shape == (batch, out_dim)
    assert jnp.allclose(out_f32, ref, atol=1e-4, rtol=1e-4), "f32 mismatch vs. reference"

    # Uneven batch exercises the wrapper-side zero-padding path.
    out_odd = jax.block_until_ready(decoder_forward(x[:300], weights, biases))
    assert out_odd.shape == (300, out_dim)
    assert jnp.allclose(out_odd, ref[:300], atol=5e-2, rtol=5e-2), "padded-batch mismatch"

    print("KERNEL_OK")
</pallas_src>

<mosaic_0001>
module attributes {stable_mosaic.version = 11 : i64} {
  func.func @_decoder_kernel(%arg0: i32, %arg1: memref<128x16xbf16, #tpu.memory_space<vmem>>, %arg2: memref<16x32xbf16, #tpu.memory_space<vmem>>, %arg3: memref<1x32xf32, #tpu.memory_space<vmem>>, %arg4: memref<32x32xbf16, #tpu.memory_space<vmem>>, %arg5: memref<1x32xf32, #tpu.memory_space<vmem>>, %arg6: memref<32x32xbf16, #tpu.memory_space<vmem>>, %arg7: memref<1x32xf32, #tpu.memory_space<vmem>>, %arg8: memref<32x8xbf16, #tpu.memory_space<vmem>>, %arg9: memref<1x8xf32, #tpu.memory_space<vmem>>, %arg10: memref<128x8xf32, #tpu.memory_space<vmem>>) attributes {dimension_semantics = [#tpu.dimension_semantics<parallel>], iteration_bounds = array<i64: 4>, scalar_prefetch = 0 : i64, scratch_operands = 0 : i64, tpu.core_type = #tpu.core_type<tc>, window_params = [{transform_indices = @transform_0, window_bounds = array<i64: 128, 16>}, {pipeline_mode = #tpu.pipeline_mode<synchronous>, transform_indices = @transform_1, window_bounds = array<i64: 16, 32>}, {pipeline_mode = #tpu.pipeline_mode<synchronous>, transform_indices = @transform_2, window_bounds = array<i64: 1, 32>}, {pipeline_mode = #tpu.pipeline_mode<synchronous>, transform_indices = @transform_3, window_bounds = array<i64: 32, 32>}, {pipeline_mode = #tpu.pipeline_mode<synchronous>, transform_indices = @transform_4, window_bounds = array<i64: 1, 32>}, {pipeline_mode = #tpu.pipeline_mode<synchronous>, transform_indices = @transform_5, window_bounds = array<i64: 32, 32>}, {pipeline_mode = #tpu.pipeline_mode<synchronous>, transform_indices = @transform_6, window_bounds = array<i64: 1, 32>}, {pipeline_mode = #tpu.pipeline_mode<synchronous>, transform_indices = @transform_7, window_bounds = array<i64: 32, 8>}, {pipeline_mode = #tpu.pipeline_mode<synchronous>, transform_indices = @transform_8, window_bounds = array<i64: 1, 8>}, {transform_indices = @transform_9, window_bounds = array<i64: 128, 8>}]} {
    %c0 = arith.constant 0 : index
    %c0_0 = arith.constant 0 : index
    %0 = vector.load %arg1[%c0, %c0_0] : memref<128x16xbf16, #tpu.memory_space<vmem>>, vector<128x16xbf16>
    %c0_1 = arith.constant 0 : index
    %c0_2 = arith.constant 0 : index
    %1 = vector.load %arg2[%c0_1, %c0_2] : memref<16x32xbf16, #tpu.memory_space<vmem>>, vector<16x32xbf16>
    %c0_3 = arith.constant 0 : index
    %c0_4 = arith.constant 0 : index
    %2 = vector.load %arg3[%c0_3, %c0_4] : memref<1x32xf32, #tpu.memory_space<vmem>>, vector<1x32xf32>
    %cst = arith.constant dense<0.000000e+00> : vector<128x32xf32>
    %3 = tpu.matmul %0, %1, %cst {dimension_numbers = #tpu.dot_dimension_numbers<[1], [0], [0], [1], [0, 0, 1, 1], [], []>} : vector<128x16xbf16>, vector<16x32xbf16>, vector<128x32xf32> -> vector<128x32xf32>
    %4 = vector.broadcast %2 : vector<1x32xf32> to vector<128x32xf32>
    %5 = arith.addf %3, %4 : vector<128x32xf32>
    %6 = math.tanh %5 : vector<128x32xf32>
    %c0_5 = arith.constant 0 : index
    %c0_6 = arith.constant 0 : index
    %7 = vector.load %arg4[%c0_5, %c0_6] : memref<32x32xbf16, #tpu.memory_space<vmem>>, vector<32x32xbf16>
    %c0_7 = arith.constant 0 : index
    %c0_8 = arith.constant 0 : index
    %8 = vector.load %arg5[%c0_7, %c0_8] : memref<1x32xf32, #tpu.memory_space<vmem>>, vector<1x32xf32>
    %9 = arith.truncf %6 : vector<128x32xf32> to vector<128x32xbf16>
    %cst_9 = arith.constant dense<0.000000e+00> : vector<128x32xf32>
    %10 = tpu.matmul %9, %7, %cst_9 {dimension_numbers = #tpu.dot_dimension_numbers<[1], [0], [0], [1], [0, 0, 1, 1], [], []>} : vector<128x32xbf16>, vector<32x32xbf16>, vector<128x32xf32> -> vector<128x32xf32>
    %11 = vector.broadcast %8 : vector<1x32xf32> to vector<128x32xf32>
    %12 = arith.addf %10, %11 : vector<128x32xf32>
    %13 = math.tanh %12 : vector<128x32xf32>
    %c0_10 = arith.constant 0 : index
    %c0_11 = arith.constant 0 : index
    %14 = vector.load %arg6[%c0_10, %c0_11] : memref<32x32xbf16, #tpu.memory_space<vmem>>, vector<32x32xbf16>
    %c0_12 = arith.constant 0 : index
    %c0_13 = arith.constant 0 : index
    %15 = vector.load %arg7[%c0_12, %c0_13] : memref<1x32xf32, #tpu.memory_space<vmem>>, vector<1x32xf32>
    %16 = arith.truncf %13 : vector<128x32xf32> to vector<128x32xbf16>
    %cst_14 = arith.constant dense<0.000000e+00> : vector<128x32xf32>
    %17 = tpu.matmul %16, %14, %cst_14 {dimension_numbers = #tpu.dot_dimension_numbers<[1], [0], [0], [1], [0, 0, 1, 1], [], []>} : vector<128x32xbf16>, vector<32x32xbf16>, vector<128x32xf32> -> vector<128x32xf32>
    %18 = vector.broadcast %15 : vector<1x32xf32> to vector<128x32xf32>
    %19 = arith.addf %17, %18 : vector<128x32xf32>
    %20 = math.tanh %19 : vector<128x32xf32>
    %c0_15 = arith.constant 0 : index
    %c0_16 = arith.constant 0 : index
    %21 = vector.load %arg8[%c0_15, %c0_16] : memref<32x8xbf16, #tpu.memory_space<vmem>>, vector<32x8xbf16>
    %c0_17 = arith.constant 0 : index
    %c0_18 = arith.constant 0 : index
    %22 = vector.load %arg9[%c0_17, %c0_18] : memref<1x8xf32, #tpu.memory_space<vmem>>, vector<1x8xf32>
    %23 = arith.truncf %20 : vector<128x32xf32> to vector<128x32xbf16>
    %cst_19 = arith.constant dense<0.000000e+00> : vector<128x8xf32>
    %24 = tpu.matmul %23, %21, %cst_19 {dimension_numbers = #tpu.dot_dimension_numbers<[1], [0], [0], [1], [0, 0, 1, 1], [], []>} : vector<128x32xbf16>, vector<32x8xbf16>, vector<128x8xf32> -> vector<128x8xf32>
    %25 = vector.broadcast %22 : vector<1x8xf32> to vector<128x8xf32>
    %26 = arith.addf %24, %25 : vector<128x8xf32>
    %c0_20 = arith.constant 0 : index
    %c0_21 = arith.constant 0 : index
    %27 = vector.load %arg10[%c0_20, %c0_21] : memref<128x8xf32, #tpu.memory_space<vmem>>, vector<128x8xf32>
    tpu.vector_store %arg10[%c0_20, %c0_21], %26 {strides = array<i32>} : memref<128x8xf32, #tpu.memory_space<vmem>>, vector<128x8xf32>,
    return
  }
  func.func @transform_0(%arg0: i32) -> (i32, i32) {
    %c0_i32 = arith.constant 0 : i32
    %c0_i32_0 = arith.constant 0 : i32
    return %arg0, %c0_i32 : i32, i32
  }
  func.func @transform_1(%arg0: i32) -> (i32, i32) {
    %c0_i32 = arith.constant 0 : i32
    %c0_i32_0 = arith.constant 0 : i32
    %c0_i32_1 = arith.constant 0 : i32
    return %c0_i32, %c0_i32_0 : i32, i32
  }
  func.func @transform_2(%arg0: i32) -> (i32, i32) {
    %c0_i32 = arith.constant 0 : i32
    %c0_i32_0 = arith.constant 0 : i32
    %c0_i32_1 = arith.constant 0 : i32
    return %c0_i32, %c0_i32_0 : i32, i32
  }
  func.func @transform_3(%arg0: i32) -> (i32, i32) {
    %c0_i32 = arith.constant 0 : i32
    %c0_i32_0 = arith.constant 0 : i32
    %c0_i32_1 = arith.constant 0 : i32
    return %c0_i32, %c0_i32_0 : i32, i32
  }
  func.func @transform_4(%arg0: i32) -> (i32, i32) {
    %c0_i32 = arith.constant 0 : i32
    %c0_i32_0 = arith.constant 0 : i32
    %c0_i32_1 = arith.constant 0 : i32
    return %c0_i32, %c0_i32_0 : i32, i32
  }
  func.func @transform_5(%arg0: i32) -> (i32, i32) {
    %c0_i32 = arith.constant 0 : i32
    %c0_i32_0 = arith.constant 0 : i32
    %c0_i32_1 = arith.constant 0 : i32
    return %c0_i32, %c0_i32_0 : i32, i32
  }
  func.func @transform_6(%arg0: i32) -> (i32, i32) {
    %c0_i32 = arith.constant 0 : i32
    %c0_i32_0 = arith.constant 0 : i32
    %c0_i32_1 = arith.constant 0 : i32
    return %c0_i32, %c0_i32_0 : i32, i32
  }
  func.func @transform_7(%arg0: i32) -> (i32, i32) {
    %c0_i32 = arith.constant 0 : i32
    %c0_i32_0 = arith.constant 0 : i32
    %c0_i32_1 = arith.constant 0 : i32
    return %c0_i32, %c0_i32_0 : i32, i32
  }
  func.func @transform_8(%arg0: i32) -> (i32, i32) {
    %c0_i32 = arith.constant 0 : i32
    %c0_i32_0 = arith.constant 0 : i32
    %c0_i32_1 = arith.constant 0 : i32
    return %c0_i32, %c0_i32_0 : i32, i32
  }
  func.func @transform_9(%arg0: i32) -> (i32, i32) {
    %c0_i32 = arith.constant 0 : i32
    %c0_i32_0 = arith.constant 0 : i32
    return %arg0, %c0_i32 : i32, i32
  }
}

</mosaic_0001>

<bundles_post_ra>
// kernel: tpu_custom_call.1
= control target key start
LH: loop header
LB: loop body
LE: loop exit
PB: predicated region body
PF: predicated region fallthrough
CT: control target
= control target key end

     0   :  { %s1188_s30 = smov 0   ;;  %s1362_s0 = inlined_call_operand.vmem [shape: bf16[512,16], index: 0, kind: input, shape index: {}]   ;;  %s1363_s1 = inlined_call_operand.vmem [shape: bf16[16,32], index: 1, kind: input, shape index: {}]   ;;  %s1364_s2 = inlined_call_operand.vmem [shape: f32[1,32], index: 2, kind: input, shape index: {}]   ;;  %s1365_s3 = inlined_call_operand.vmem [shape: bf16[32,32], index: 3, kind: input, shape index: {}]   ;;  %s1366_s4 = inlined_call_operand.vmem [shape: f32[1,32], index: 4, kind: input, shape index: {}]   ;;  %s1367_s5 = inlined_call_operand.vmem [shape: bf16[32,32], index: 5, kind: input, shape index: {}]   ;;  %s1368_s6 = inlined_call_operand.vmem [shape: f32[1,32], index: 6, kind: input, shape index: {}]   ;;  %s1369_s7 = inlined_call_operand.vmem [shape: bf16[32,8], index: 7, kind: input, shape index: {}]   ;;  %s1370_s8 = inlined_call_operand.vmem [shape: f32[1,8], index: 8, kind: input, shape index: {}]   ;;  %s1371_s9 = inlined_call_operand.vmem [shape: f32[512,8], index: 9, kind: output, shape index: {}]  }
   0x1 LB: > { %s904_s10 = sadd.s32 4294967295, %s1136_s30   ;;  %p908_p0 = scmp.ge.s32.totalorder %s1136_s30, 1  ;;  %s1136_s30 = sphi %s1188_s30, %s19_s30  }
   0x2   : > { %p288_p1 = scmp.lt.s32.totalorder %s1136_s30, 5 }
   0x4   : > { %p289_p2 = pnand %p908_p0, %p288_p1 }
   0x5   : > { %s909_s13 = sshll.u32 (!%p289_p2), %s904_s10, 4 }
   0x6   : > { %292 = sbr.rel (%p289_p2) target bundleno = 711 (0x2c7), region = 56  ;;  %p325_p3 = scmp.lt.s32.totalorder (!%p289_p2), %s909_s13, 63 }
   0xb   : > { %v1015_v0 = vld [vmem:[%s1363_s1] sm:$0xff]  ;;  %s1373_s13 = smov (!%p325_p3, %s909_s13), 63  ;;  %vm405_vm0 = vcmask 130048   ;;  %v1017_v8 = vld [vmem:[%s1365_s3 + $0x8] sm:$0xff]  ;;  %vm523_vm1 = vcmask 261120   ;;  %vm831_vm2 = vcmask 64512  }
   0xc   : > { %437 = vmatpush.bf16.msra.mxu0 %v1015_v0  ;;  %s910_s14 = sshll.u32 %s1373_s13, 2  ;;  %554 = vmatpush.bf16.msra.mxu1 %v1017_v8  ;;  %v1016_v10 = vld [vmem:[%s1365_s3] sm:$0xff] }
   0xd   : > { %s328_s17 = scalar_lea.vmem %s1362_s0, %s910_s14  ;;  %v1222_v12 = vld [vmem:[%s1364_s2] ss:$0 sm:$0xff] }
   0xe   : > { %v1007_v1 = vld [vmem:[%s328_s17] sm:$0xff]  ;;  %v1008_v2 = vld [vmem:[%s328_s17 + $0x8] sm:$0xff]  ;;  %v1009_v3 = vld [vmem:[%s328_s17 + $0x10] sm:$0xff] }
   0xf   : > { %949 = vmatmul.msk.bf16.vlgmr.msra.gmra.mxu0 %vm405_vm0, %v1007_v1  ;;  %v1010_v4 = vld [vmem:[%s328_s17 + $0x18] sm:$0xff]  ;;  %v1011_v5 = vld [vmem:[%s328_s17 + $0x20] sm:$0xff]  ;;  %v1012_v6 = vld [vmem:[%s328_s17 + $0x28] sm:$0xff] }
  0x10   : > { %v1013_v7 = vld [vmem:[%s328_s17 + $0x30] sm:$0xff]  ;;  %v1014_v9 = vld [vmem:[%s328_s17 + $0x38] sm:$0xff]  ;;  %555 = vmatpush.bf16.msra.mxu1 %v1016_v10  ;;  %v1019_v1 = vld [vmem:[%s1367_s5 + $0x8] sm:$0xff]  ;;  %s912_s17 = sshll.u32 %s1373_s13, 3 }
  0x11   : > { %671 = vmatpush.bf16.msra.mxu2 %v1019_v1  ;;  %s1325_s22 = scalar_lea.vmem %s1371_s9, %s912_s17 }
  0x1f   : > { %950 = vmatmul.msk.bf16.gmra.mxu0 %vm405_vm0, %v1008_v2 }
  0x2f   : > { %951 = vmatmul.msk.bf16.gmra.mxu0 %vm405_vm0, %v1009_v3  ;;  %v1018_v3 = vld [vmem:[%s1367_s5] sm:$0xff] }
  0x30   : > { %672 = vmatpush.bf16.msra.mxu2 %v1018_v3 }
  0x3f   : > { %952 = vmatmul.msk.bf16.gmra.mxu0 %vm405_vm0, %v1010_v4 }
  0x4f   : > { %953 = vmatmul.msk.bf16.gmra.mxu0 %vm405_vm0, %v1011_v5 }
  0x5f   : > { %954 = vmatmul.msk.bf16.gmra.mxu0 %vm405_vm0, %v1012_v6 }
  0x6f   : > { %955 = vmatmul.msk.bf16.gmra.mxu0 %vm405_vm0, %v1013_v7  ;;  %v1257_v7 = vld [vmem:[%s1366_s4] ss:$0 sm:$0xff] }
  0x7f   : > { %956 = vmatmul.msk.bf16.gmra.mxu0 %vm405_vm0, %v1014_v9 }
  0x8c   : > { %v439_v11 = vpop.f32.mrf.mxu0 }
  0x8d   : > { %v440_v13 = vadd.f32 %v1222_v12, %v439_v11 }
  0x8f   : > { %1034 = vtanh.f32 %v440_v13 }
  0x94   : > { %v441_v14 = vpop.f32.mrf.mxu0 }
  0x95   : > { %v442_v15 = vadd.f32 %v1222_v12, %v441_v14  ;;  %v1035_v16 = vpop.eup %1034 }
  0x97   : > { %1036 = vtanh.f32 %v442_v15 }
  0x9c   : > { %v444_v17 = vpop.f32.mrf.mxu0 }
  0x9d   : > { %v1037_v18 = vpop.eup %1036  ;;  %v445_v20 = vadd.f32 %v1222_v12, %v444_v17 }
  0x9e   : > { %v500_v19 = vpack.c.bf16 %v1037_v18, %v1035_v16 }
  0x9f   : > { %1038 = vtanh.f32 %v445_v20 }
  0xa0   : > { %965 = vmatmul.msk.bf16.vlgmr.msra.gmra.mxu1 %vm523_vm1, %v500_v19 }
  0xa4   : > { %v446_v21 = vpop.f32.mrf.mxu0 }
  0xa5   : > { %v447_v22 = vadd.f32 %v1222_v12, %v446_v21  ;;  %v1039_v23 = vpop.eup %1038 }
  0xa7   : > { %1040 = vtanh.f32 %v447_v22 }
  0xac   : > { %v449_v24 = vpop.f32.mrf.mxu0 }
  0xad   : > { %v1041_v25 = vpop.eup %1040  ;;  %v450_v27 = vadd.f32 %v1222_v12, %v449_v24 }
  0xae   : > { %v501_v26 = vpack.c.bf16 %v1041_v25, %v1039_v23 }
  0xaf   : > { %1042 = vtanh.f32 %v450_v27 }
  0xb0   : > { %966 = vmatmul.msk.bf16.gmra.mxu1 %vm523_vm1, %v501_v26 }
  0xb4   : > { %v451_v28 = vpop.f32.mrf.mxu0 }
  0xb5   : > { %v452_v29 = vadd.f32 %v1222_v12, %v451_v28  ;;  %v1043_v30 = vpop.eup %1042 }
  0xb7   : > { %1044 = vtanh.f32 %v452_v29 }
  0xbc   : > { %v454_v31 = vpop.f32.mrf.mxu0 }
  0xbd   : > { %v1045_v32 = vpop.eup %1044  ;;  %v455_v34 = vadd.f32 %v1222_v12, %v454_v31 }
  0xbe   : > { %v502_v33 = vpack.c.bf16 %v1045_v32, %v1043_v30 }
  0xbf   : > { %1046 = vtanh.f32 %v455_v34 }
  0xc0   : > { %967 = vmatmul.msk.bf16.gmra.mxu1 %vm523_vm1, %v502_v33 }
  0xc4   : > { %v456_v35 = vpop.f32.mrf.mxu0 }
  0xc5   : > { %v457_v36 = vadd.f32 %v1222_v12, %v456_v35  ;;  %v1047_v37 = vpop.eup %1046 }
  0xc7   : > { %1048 = vtanh.f32 %v457_v36 }
  0xcc   : > { %v459_v38 = vpop.f32.mrf.mxu0 }
  0xcd   : > { %v1049_v39 = vpop.eup %1048  ;;  %v460_v41 = vadd.f32 %v1222_v12, %v459_v38 }
  0xce   : > { %v503_v40 = vpack.c.bf16 %v1049_v39, %v1047_v37 }
  0xcf   : > { %1050 = vtanh.f32 %v460_v41 }
  0xd0   : > { %968 = vmatmul.msk.bf16.gmra.mxu1 %vm523_vm1, %v503_v40 }
  0xd4   : > { %v461_v42 = vpop.f32.mrf.mxu0 }
  0xd5   : > { %v462_v43 = vadd.f32 %v1222_v12, %v461_v42  ;;  %v1051_v44 = vpop.eup %1050 }
  0xd7   : > { %1052 = vtanh.f32 %v462_v43 }
  0xdc   : > { %v464_v45 = vpop.f32.mrf.mxu0 }
  0xdd   : > { %v1053_v46 = vpop.eup %1052  ;;  %v465_v48 = vadd.f32 %v1222_v12, %v464_v45 }
  0xde   : > { %v504_v47 = vpack.c.bf16 %v1053_v46, %v1051_v44 }
  0xdf   : > { %1054 = vtanh.f32 %v465_v48 }
  0xe0   : > { %969 = vmatmul.msk.bf16.gmra.mxu1 %vm523_vm1, %v504_v47 }
  0xe4   : > { %v466_v49 = vpop.f32.mrf.mxu0 }
  0xe5   : > { %v467_v50 = vadd.f32 %v1222_v12, %v466_v49  ;;  %v1055_v51 = vpop.eup %1054 }
  0xe7   : > { %1056 = vtanh.f32 %v467_v50 }
  0xec   : > { %v469_v52 = vpop.f32.mrf.mxu0 }
  0xed   : > { %v1057_v53 = vpop.eup %1056  ;;  %v470_v55 = vadd.f32 %v1222_v12, %v469_v52 }
  0xee   : > { %v505_v54 = vpack.c.bf16 %v1057_v53, %v1055_v51 }
  0xef   : > { %1058 = vtanh.f32 %v470_v55 }
  0xf0   : > { %970 = vmatmul.msk.bf16.gmra.mxu1 %vm523_vm1, %v505_v54 }
  0xf4   : > { %v471_v56 = vpop.f32.mrf.mxu0 }
  0xf5   : > { %v472_v57 = vadd.f32 %v1222_v12, %v471_v56  ;;  %v1059_v58 = vpop.eup %1058 }
  0xf7   : > { %1060 = vtanh.f32 %v472_v57 }
  0xfc   : > { %v474_v59 = vpop.f32.mrf.mxu0 }
  0xfd   : > { %v1061_v60 = vpop.eup %1060  ;;  %v475_v62 = vadd.f32 %v1222_v12, %v474_v59 }
  0xfe   : > { %v506_v61 = vpack.c.bf16 %v1061_v60, %v1059_v58 }
  0xff   : > { %1062 = vtanh.f32 %v475_v62 }
 0x100   : > { %971 = vmatmul.msk.bf16.gmra.mxu1 %vm523_vm1, %v506_v61 }
 0x104   : > { %v476_v63 = vpop.f32.mrf.mxu0 }
 0x105   : > { %v477_v0 = vadd.f32 %v1222_v12, %v476_v63  ;;  %v1063_v2 = vpop.eup %1062  ;;  %v1021_v63 = vld [vmem:[%s1369_s7 + $0x8] sm:$0xff] }
 0x106   : > { %788 = vmatpush.bf16.msra.mxu3 %v1021_v63 }
 0x107   : > { %1064 = vtanh.f32 %v477_v0  ;;  %v1020_v0 = vld [vmem:[%s1369_s7] sm:$0xff] }
 0x10a   : > { %789 = vmatpush.bf16.msra.mxu3 %v1020_v0 }
 0x10d   : > { %v1065_v4 = vpop.eup %1064 }
 0x10e   : > { %v507_v5 = vpack.c.bf16 %v1065_v4, %v1063_v2  ;;  %v1292_v2 = vld [vmem:[%s1368_s6] ss:$0 sm:$0xff] }
 0x110   : > { %972 = vmatmul.msk.bf16.gmra.mxu1 %vm523_vm1, %v507_v5 }
 0x11d   : > { %v557_v6 = vpop.f32.mrf.mxu1 }
 0x11e   : > { %v558_v8 = vadd.f32 %v1257_v7, %v557_v6 }
 0x120   : > { %1066 = vtanh.f32 %v558_v8 }
 0x125   : > { %v559_v9 = vpop.f32.mrf.mxu1 }
 0x126   : > { %v560_v10 = vadd.f32 %v1257_v7, %v559_v9  ;;  %v1067_v11 = vpop.eup %1066 }
 0x128   : > { %1068 = vtanh.f32 %v560_v10 }
 0x12d   : > { %v562_v12 = vpop.f32.mrf.mxu1 }
 0x12e   : > { %v1069_v13 = vpop.eup %1068  ;;  %v563_v15 = vadd.f32 %v1257_v7, %v562_v12 }
 0x12f   : > { %v618_v14 = vpack.c.bf16 %v1069_v13, %v1067_v11 }
 0x130   : > { %1070 = vtanh.f32 %v563_v15 }
 0x131   : > { %981 = vmatmul.msk.bf16.vlgmr.msra.gmra.mxu2 %vm523_vm1, %v618_v14 }
 0x135   : > { %v564_v16 = vpop.f32.mrf.mxu1 }
 0x136   : > { %v565_v17 = vadd.f32 %v1257_v7, %v564_v16  ;;  %v1071_v18 = vpop.eup %1070 }
 0x138   : > { %1072 = vtanh.f32 %v565_v17 }
 0x13d   : > { %v567_v19 = vpop.f32.mrf.mxu1 }
 0x13e   : > { %v1073_v20 = vpop.eup %1072  ;;  %v568_v22 = vadd.f32 %v1257_v7, %v567_v19 }
 0x13f   : > { %v619_v21 = vpack.c.bf16 %v1073_v20, %v1071_v18 }
 0x140   : > { %1074 = vtanh.f32 %v568_v22 }
 0x141   : > { %982 = vmatmul.msk.bf16.gmra.mxu2 %vm523_vm1, %v619_v21 }
 0x145   : > { %v569_v23 = vpop.f32.mrf.mxu1 }
 0x146   : > { %v570_v24 = vadd.f32 %v1257_v7, %v569_v23  ;;  %v1075_v25 = vpop.eup %1074 }
 0x148   : > { %1076 = vtanh.f32 %v570_v24 }
 0x14d   : > { %v572_v26 = vpop.f32.mrf.mxu1 }
 0x14e   : > { %v1077_v27 = vpop.eup %1076  ;;  %v573_v29 = vadd.f32 %v1257_v7, %v572_v26 }
 0x14f   : > { %v620_v28 = vpack.c.bf16 %v1077_v27, %v1075_v25 }
 0x150   : > { %1078 = vtanh.f32 %v573_v29 }
 0x151   : > { %983 = vmatmul.msk.bf16.gmra.mxu2 %vm523_vm1, %v620_v28 }
 0x155   : > { %v574_v30 = vpop.f32.mrf.mxu1 }
 0x156   : > { %v575_v31 = vadd.f32 %v1257_v7, %v574_v30  ;;  %v1079_v32 = vpop.eup %1078 }
 0x158   : > { %1080 = vtanh.f32 %v575_v31 }
 0x15d   : > { %v577_v33 = vpop.f32.mrf.mxu1 }
 0x15e   : > { %v1081_v34 = vpop.eup %1080  ;;  %v578_v36 = vadd.f32 %v1257_v7, %v577_v33 }
 0x15f   : > { %v621_v35 = vpack.c.bf16 %v1081_v34, %v1079_v32 }
 0x160   : > { %1082 = vtanh.f32 %v578_v36 }
 0x161   : > { %984 = vmatmul.msk.bf16.gmra.mxu2 %vm523_vm1, %v621_v35 }
 0x165   : > { %v579_v37 = vpop.f32.mrf.mxu1 }
 0x166   : > { %v580_v38 = vadd.f32 %v1257_v7, %v579_v37  ;;  %v1083_v39 = vpop.eup %1082 }
 0x168   : > { %1084 = vtanh.f32 %v580_v38 }
 0x16d   : > { %v582_v40 = vpop.f32.mrf.mxu1 }
 0x16e   : > { %v1085_v41 = vpop.eup %1084  ;;  %v583_v43 = vadd.f32 %v1257_v7, %v582_v40 }
 0x16f   : > { %v622_v42 = vpack.c.bf16 %v1085_v41, %v1083_v39 }
 0x170   : > { %1086 = vtanh.f32 %v583_v43 }
 0x171   : > { %985 = vmatmul.msk.bf16.gmra.mxu2 %vm523_vm1, %v622_v42 }
 0x175   : > { %v584_v44 = vpop.f32.mrf.mxu1 }
 0x176   : > { %v585_v45 = vadd.f32 %v1257_v7, %v584_v44  ;;  %v1087_v46 = vpop.eup %1086 }
 0x178   : > { %1088 = vtanh.f32 %v585_v45 }
 0x17d   : > { %v587_v47 = vpop.f32.mrf.mxu1 }
 0x17e   : > { %v1089_v48 = vpop.eup %1088  ;;  %v588_v50 = vadd.f32 %v1257_v7, %v587_v47 }
 0x17f   : > { %v623_v49 = vpack.c.bf16 %v1089_v48, %v1087_v46 }
 0x180   : > { %1090 = vtanh.f32 %v588_v50 }
 0x181   : > { %986 = vmatmul.msk.bf16.gmra.mxu2 %vm523_vm1, %v623_v49 }
 0x185   : > { %v589_v51 = vpop.f32.mrf.mxu1 }
 0x186   : > { %v590_v52 = vadd.f32 %v1257_v7, %v589_v51  ;;  %v1091_v53 = vpop.eup %1090 }
 0x188   : > { %1092 = vtanh.f32 %v590_v52 }
 0x18d   : > { %v592_v54 = vpop.f32.mrf.mxu1 }
 0x18e   : > { %v1093_v55 = vpop.eup %1092  ;;  %v593_v57 = vadd.f32 %v1257_v7, %v592_v54 }
 0x18f   : > { %v624_v56 = vpack.c.bf16 %v1093_v55, %v1091_v53 }
 0x190   : > { %1094 = vtanh.f32 %v593_v57 }
 0x191   : > { %987 = vmatmul.msk.bf16.gmra.mxu2 %vm523_vm1, %v624_v56 }
 0x195   : > { %v594_v58 = vpop.f32.mrf.mxu1 }
 0x196   : > { %v595_v59 = vadd.f32 %v1257_v7, %v594_v58  ;;  %v1095_v60 = vpop.eup %1094  ;;  %v1033_v58 = vld [vmem:[%s1370_s8] ss:$0 sm:$0xff] }
 0x198   : > { %1096 = vtanh.f32 %v595_v59 }
 0x19e   : > { %v1097_v61 = vpop.eup %1096 }
 0x19f   : > { %v625_v62 = vpack.c.bf16 %v1097_v61, %v1095_v60 }
 0x1a1   : > { %988 = vmatmul.msk.bf16.gmra.mxu2 %vm523_vm1, %v625_v62 }
 0x1b4   : > { %v674_v1 = vpop.f32.mrf.mxu2 }
 0x1b5   : > { %v675_v3 = vadd.f32 %v1292_v2, %v674_v1 }
 0x1b7   : > { %1098 = vtanh.f32 %v675_v3 }
 0x1bc   : > { %v676_v4 = vpop.f32.mrf.mxu2 }
 0x1bd   : > { %v677_v5 = vadd.f32 %v1292_v2, %v676_v4  ;;  %v1099_v6 = vpop.eup %1098 }
 0x1bf   : > { %1100 = vtanh.f32 %v677_v5 }
 0x1c4   : > { %v679_v7 = vpop.f32.mrf.mxu2 }
 0x1c5   : > { %v1101_v8 = vpop.eup %1100  ;;  %v680_v10 = vadd.f32 %v1292_v2, %v679_v7 }
 0x1c6   : > { %v735_v9 = vpack.c.bf16 %v1101_v8, %v1099_v6 }
 0x1c7   : > { %1102 = vtanh.f32 %v680_v10 }
 0x1c8   : > { %997 = vmatmul.msk.bf16.vlgmr.msra.gmra.mxu3 %vm523_vm1, %v735_v9 }
 0x1cc   : > { %v681_v11 = vpop.f32.mrf.mxu2 }
 0x1cd   : > { %v682_v12 = vadd.f32 %v1292_v2, %v681_v11  ;;  %v1103_v13 = vpop.eup %1102 }
 0x1cf   : > { %1104 = vtanh.f32 %v682_v12 }
 0x1d4   : > { %v684_v14 = vpop.f32.mrf.mxu2 }
 0x1d5   : > { %v1105_v15 = vpop.eup %1104  ;;  %v685_v17 = vadd.f32 %v1292_v2, %v684_v14 }
 0x1d6   : > { %v736_v16 = vpack.c.bf16 %v1105_v15, %v1103_v13 }
 0x1d7   : > { %1106 = vtanh.f32 %v685_v17 }
 0x1d8   : > { %998 = vmatmul.msk.bf16.gmra.mxu3 %vm523_vm1, %v736_v16 }
 0x1dc   : > { %v686_v18 = vpop.f32.mrf.mxu2 }
 0x1dd   : > { %v687_v19 = vadd.f32 %v1292_v2, %v686_v18  ;;  %v1107_v20 = vpop.eup %1106 }
 0x1df   : > { %1108 = vtanh.f32 %v687_v19 }
 0x1e4   : > { %v689_v21 = vpop.f32.mrf.mxu2 }
 0x1e5   : > { %v1109_v22 = vpop.eup %1108  ;;  %v690_v24 = vadd.f32 %v1292_v2, %v689_v21 }
 0x1e6   : > { %v737_v23 = vpack.c.bf16 %v1109_v22, %v1107_v20 }
 0x1e7   : > { %1110 = vtanh.f32 %v690_v24 }
 0x1e8   : > { %999 = vmatmul.msk.bf16.gmra.mxu3 %vm523_vm1, %v737_v23 }
 0x1ec   : > { %v691_v25 = vpop.f32.mrf.mxu2 }
 0x1ed   : > { %v692_v26 = vadd.f32 %v1292_v2, %v691_v25  ;;  %v1111_v27 = vpop.eup %1110 }
 0x1ef   : > { %1112 = vtanh.f32 %v692_v26 }
 0x1f4   : > { %v694_v28 = vpop.f32.mrf.mxu2 }
 0x1f5   : > { %v1113_v29 = vpop.eup %1112  ;;  %v695_v31 = vadd.f32 %v1292_v2, %v694_v28 }
 0x1f6   : > { %v738_v30 = vpack.c.bf16 %v1113_v29, %v1111_v27 }
 0x1f7   : > { %1114 = vtanh.f32 %v695_v31 }
 0x1f8   : > { %1000 = vmatmul.msk.bf16.gmra.mxu3 %vm523_vm1, %v738_v30 }
 0x1fc   : > { %v696_v32 = vpop.f32.mrf.mxu2 }
 0x1fd   : > { %v697_v33 = vadd.f32 %v1292_v2, %v696_v32  ;;  %v1115_v34 = vpop.eup %1114 }
 0x1ff   : > { %1116 = vtanh.f32 %v697_v33 }
 0x204   : > { %v699_v35 = vpop.f32.mrf.mxu2 }
 0x205   : > { %v1117_v36 = vpop.eup %1116  ;;  %v700_v38 = vadd.f32 %v1292_v2, %v699_v35 }
 0x206   : > { %v739_v37 = vpack.c.bf16 %v1117_v36, %v1115_v34 }
 0x207   : > { %1118 = vtanh.f32 %v700_v38 }
 0x208   : > { %1001 = vmatmul.msk.bf16.gmra.mxu3 %vm523_vm1, %v739_v37 }
 0x20c   : > { %v701_v39 = vpop.f32.mrf.mxu2 }
 0x20d   : > { %v702_v40 = vadd.f32 %v1292_v2, %v701_v39  ;;  %v1119_v41 = vpop.eup %1118 }
 0x20f   : > { %1120 = vtanh.f32 %v702_v40 }
 0x214   : > { %v704_v42 = vpop.f32.mrf.mxu2 }
 0x215   : > { %v1121_v43 = vpop.eup %1120  ;;  %v705_v45 = vadd.f32 %v1292_v2, %v704_v42 }
 0x216   : > { %v740_v44 = vpack.c.bf16 %v1121_v43, %v1119_v41 }
 0x217   : > { %1122 = vtanh.f32 %v705_v45 }
 0x218   : > { %1002 = vmatmul.msk.bf16.gmra.mxu3 %vm523_vm1, %v740_v44 }
 0x21c   : > { %v706_v46 = vpop.f32.mrf.mxu2 }
 0x21d   : > { %v707_v47 = vadd.f32 %v1292_v2, %v706_v46  ;;  %v1123_v48 = vpop.eup %1122 }
 0x21f   : > { %1124 = vtanh.f32 %v707_v47 }
 0x224   : > { %v709_v49 = vpop.f32.mrf.mxu2 }
 0x225   : > { %v1125_v50 = vpop.eup %1124  ;;  %v710_v52 = vadd.f32 %v1292_v2, %v709_v49 }
 0x226   : > { %v741_v51 = vpack.c.bf16 %v1125_v50, %v1123_v48 }
 0x227   : > { %1126 = vtanh.f32 %v710_v52 }
 0x228   : > { %1003 = vmatmul.msk.bf16.gmra.mxu3 %vm523_vm1, %v741_v51 }
 0x22c   : > { %v711_v53 = vpop.f32.mrf.mxu2 }
 0x22d   : > { %v712_v54 = vadd.f32 %v1292_v2, %v711_v53  ;;  %v1127_v55 = vpop.eup %1126 }
 0x22f   : > { %1128 = vtanh.f32 %v712_v54 }
 0x235   : > { %v1129_v56 = vpop.eup %1128 }
 0x236   : > { %v742_v57 = vpack.c.bf16 %v1129_v56, %v1127_v55 }
 0x238   : > { %1004 = vmatmul.msk.bf16.gmra.mxu3 %vm523_vm1, %v742_v57 }
 0x24b   : > { %v791_v59 = vpop.f32.mrf.mxu3 }
 0x24c   : > { %v792_v60 = vadd.f32 %v1033_v58, %v791_v59 }
 0x24e   : > { %832 = vst.msk [vmem:[%s1325_s22] sm:$0xff] %vm831_vm2, %v792_v60 }
 0x253   : > { %v793_v61 = vpop.f32.mrf.mxu3 }
 0x254   : > { %v794_v62 = vadd.f32 %v1033_v58, %v793_v61 }
 0x256   : > { %833 = vst.msk [vmem:[%s1325_s22 + $0x8] sm:$0xff] %vm831_vm2, %v794_v62 }
 0x25b   : > { %v796_v63 = vpop.f32.mrf.mxu3 }
 0x25c   : > { %v797_v0 = vadd.f32 %v1033_v58, %v796_v63 }
 0x25e   : > { %834 = vst.msk [vmem:[%s1325_s22 + $0x10] sm:$0xff] %vm831_vm2, %v797_v0 }
 0x263   : > { %v798_v1 = vpop.f32.mrf.mxu3 }
 0x264   : > { %v799_v2 = vadd.f32 %v1033_v58, %v798_v1 }
 0x266   : > { %835 = vst.msk [vmem:[%s1325_s22 + $0x18] sm:$0xff] %vm831_vm2, %v799_v2 }
 0x26b   : > { %v801_v3 = vpop.f32.mrf.mxu3 }
 0x26c   : > { %v802_v4 = vadd.f32 %v1033_v58, %v801_v3 }
 0x26e   : > { %836 = vst.msk [vmem:[%s1325_s22 + $0x20] sm:$0xff] %vm831_vm2, %v802_v4 }
 0x273   : > { %v803_v5 = vpop.f32.mrf.mxu3 }
 0x274   : > { %v804_v6 = vadd.f32 %v1033_v58, %v803_v5 }
 0x276   : > { %837 = vst.msk [vmem:[%s1325_s22 + $0x28] sm:$0xff] %vm831_vm2, %v804_v6 }
 0x27b   : > { %v806_v7 = vpop.f32.mrf.mxu3 }
 0x27c   : > { %v807_v8 = vadd.f32 %v1033_v58, %v806_v7 }
 0x27e   : > { %838 = vst.msk [vmem:[%s1325_s22 + $0x30] sm:$0xff] %vm831_vm2, %v807_v8 }
 0x283   : > { %v808_v9 = vpop.f32.mrf.mxu3 }
 0x284   : > { %v809_v10 = vadd.f32 %v1033_v58, %v808_v9 }
 0x286   : > { %839 = vst.msk [vmem:[%s1325_s22 + $0x38] sm:$0xff] %vm831_vm2, %v809_v10 }
 0x28b   : > { %v811_v11 = vpop.f32.mrf.mxu3 }
 0x28c   : > { %v812_v12 = vadd.f32 %v1033_v58, %v811_v11 }
 0x28e   : > { %840 = vst.msk [vmem:[%s1325_s22 + $0x40] sm:$0xff] %vm831_vm2, %v812_v12 }
 0x293   : > { %v813_v13 = vpop.f32.mrf.mxu3 }
 0x294   : > { %v814_v14 = vadd.f32 %v1033_v58, %v813_v13 }
 0x296   : > { %841 = vst.msk [vmem:[%s1325_s22 + $0x48] sm:$0xff] %vm831_vm2, %v814_v14 }
 0x29b   : > { %v816_v15 = vpop.f32.mrf.mxu3 }
 0x29c   : > { %v817_v16 = vadd.f32 %v1033_v58, %v816_v15 }
 0x29e   : > { %842 = vst.msk [vmem:[%s1325_s22 + $0x50] sm:$0xff] %vm831_vm2, %v817_v16 }
 0x2a3   : > { %v818_v17 = vpop.f32.mrf.mxu3 }
 0x2a4   : > { %v819_v18 = vadd.f32 %v1033_v58, %v818_v17 }
 0x2a6   : > { %843 = vst.msk [vmem:[%s1325_s22 + $0x58] sm:$0xff] %vm831_vm2, %v819_v18 }
 0x2ab   : > { %v821_v19 = vpop.f32.mrf.mxu3 }
 0x2ac   : > { %v822_v20 = vadd.f32 %v1033_v58, %v821_v19 }
 0x2ae   : > { %844 = vst.msk [vmem:[%s1325_s22 + $0x60] sm:$0xff] %vm831_vm2, %v822_v20 }
 0x2b3   : > { %v823_v21 = vpop.f32.mrf.mxu3 }
 0x2b4   : > { %v824_v22 = vadd.f32 %v1033_v58, %v823_v21 }
 0x2b6   : > { %845 = vst.msk [vmem:[%s1325_s22 + $0x68] sm:$0xff] %vm831_vm2, %v824_v22 }
 0x2bb   : > { %v826_v23 = vpop.f32.mrf.mxu3 }
 0x2bc   : > { %v827_v24 = vadd.f32 %v1033_v58, %v826_v23 }
 0x2be   : > { %846 = vst.msk [vmem:[%s1325_s22 + $0x70] sm:$0xff] %vm831_vm2, %v827_v24 }
 0x2c3   : > { %v828_v25 = vpop.f32.mrf.mxu3 }
 0x2c4   : > { %v829_v26 = vadd.f32 %v1033_v58, %v828_v25 }
 0x2c6   : > { %847 = vst.msk [vmem:[%s1325_s22 + $0x78] sm:$0xff] %vm831_vm2, %v829_v26 }
 0x2c7 PF: > { %s19_s30 = sadd.s32 1, %s1136_s30  }
 0x2c8   : > { %p16_p4 = scmp.ge.s32.totalorder %s19_s30, 6  }
 0x2ca   :  { %18 = sbr.rel (!%p16_p4) target bundleno = 1 (0x1), region = 86 }

</bundles_post_ra>
